<compile_context>
chip_gen: v7x
topology: tpu7x:2x2x1
jax: 0.10.0
libtpu: 0.0.40
codegen_flags: <defaults>
</compile_context>

<pallas_src>
import functools
import math

import jax
import jax.numpy as jnp
from jax.experimental import pallas as pl
from jax.experimental.pallas import tpu as pltpu

_LANE = 128
# Target bytes per HBM->HBM DMA chunk.  No VMEM staging, so chunks can be big;
# per-grid-step overhead (~0.35 us) becomes noise.
_TARGET_CHUNK_BYTES = 32 * 1024 * 1024
# Below this, pallas_call launch overhead dominates -> metadata reshape wins.
_MIN_PALLAS_BYTES = 1 * 1024 * 1024


def _hbm_copy_kernel(x_hbm, o_hbm, sem, *, chunk_rows, tail_rows, num_chunks):
    """One grid step = one direct HBM->HBM DMA of a contiguous row chunk."""
    i = pl.program_id(0)
    start = i * chunk_rows

    # Full-size chunks (static size -> single DMA descriptor shape).
    @pl.when(i < num_chunks - 1)
    def _():
        cp = pltpu.make_async_copy(
            x_hbm.at[pl.ds(start, chunk_rows), :],
            o_hbm.at[pl.ds(start, chunk_rows), :],
            sem.at[0],
        )
        cp.start()
        cp.wait()

    # Last (possibly ragged) chunk, also a static size.
    @pl.when(i == num_chunks - 1)
    def _():
        cp = pltpu.make_async_copy(
            x_hbm.at[pl.ds(start, tail_rows), :],
            o_hbm.at[pl.ds(start, tail_rows), :],
            sem.at[0],
        )
        cp.start()
        cp.wait()


def _choose_width(total):
    """Largest lane-friendly width (multiple of 128) dividing `total`."""
    for w in (8192, 4096, 2048, 1024, 512, 256, 128):
        if total % w == 0:
            return w
    return None


def _chunk_plan(rows, width, itemsize):
    """Return (chunk_rows, tail_rows, num_chunks) — all static Python ints."""
    total_bytes = rows * width * itemsize
    num_chunks = max(1, pl.cdiv(total_bytes, _TARGET_CHUNK_BYTES))
    # v7x has 2 TensorCores: guarantee grid >= 2 so both cores drive DMAs.
    # Neutral on single-TC v5e/v6e.
    if rows >= 2:
        num_chunks = max(num_chunks, 2)
    num_chunks = min(num_chunks, rows)
    chunk_rows = pl.cdiv(rows, num_chunks)
    num_chunks = pl.cdiv(rows, chunk_rows)
    tail_rows = rows - (num_chunks - 1) * chunk_rows
    return chunk_rows, tail_rows, num_chunks


def _pallas_copy_reshape(x, out_shape):
    """Materializing reshape: chunked HBM->HBM DMA copy, then metadata view."""
    total = x.size
    itemsize = jnp.dtype(x.dtype).itemsize
    total_bytes = total * itemsize
    width = _choose_width(total)
    if width is None or total_bytes < _MIN_PALLAS_BYTES:
        # No clean lane-dense factorization, or too small for a kernel launch
        # to pay off — a reshape is metadata-only anyway.
        return jnp.reshape(x, out_shape)

    rows = total // width
    chunk_rows, tail_rows, num_chunks = _chunk_plan(rows, width, itemsize)
    flat2d = jnp.reshape(x, (rows, width))  # metadata-only

    kernel = functools.partial(
        _hbm_copy_kernel,
        chunk_rows=chunk_rows,
        tail_rows=tail_rows,
        num_chunks=num_chunks,
    )
    copied = pl.pallas_call(
        kernel,
        out_shape=jax.ShapeDtypeStruct((rows, width), x.dtype),
        grid_spec=pltpu.PrefetchScalarGridSpec(
            num_scalar_prefetch=0,
            grid=(num_chunks,),
            # Raw HBM refs on both sides: no VMEM staging, DMA engine only.
            in_specs=[pl.BlockSpec(memory_space=pl.ANY)],
            out_specs=pl.BlockSpec(memory_space=pl.ANY),
            scratch_shapes=[pltpu.SemaphoreType.DMA((1,))],
        ),
        compiler_params=pltpu.CompilerParams(
            dimension_semantics=("parallel",),
        ),
        cost_estimate=pl.CostEstimate(
            flops=0, transcendentals=0, bytes_accessed=2 * total_bytes),
        # NOTE: no input_output_aliases — without guaranteed donation XLA
        # would insert a defensive copy (an extra full HBM pass).
    )(flat2d)
    return jnp.reshape(copied, out_shape)  # metadata-only


def _resolve_shape(target_shape, total):
    """Resolve a single -1 in the target shape (PyTorch .view semantics)."""
    shape = list(target_shape)
    neg = [i for i, s in enumerate(shape) if s == -1]
    if len(neg) > 1:
        raise ValueError("only one dimension can be -1")
    if neg:
        known = math.prod(s for s in shape if s != -1)
        if known == 0 or total % known != 0:
            raise ValueError(f"cannot view {total} elements as {target_shape}")
        shape[neg[0]] = total // known
    if math.prod(shape) != total:
        raise ValueError(f"cannot view {total} elements as {tuple(shape)}")
    return tuple(shape)


class Reshape:
    """JAX/Pallas equivalent of the PyTorch Reshape nn.Module.

    Default: metadata-only reshape (exact x.view(shape) semantics, zero HBM
    traffic).  `materialize=True` requests an explicit copy, implemented as a
    chunked HBM->HBM DMA Pallas kernel.
    """

    def __init__(self, *args, materialize=False):
        self.shape = args
        self.materialize = materialize

    def __call__(self, x):
        out_shape = _resolve_shape(self.shape, x.size)
        if not self.materialize:
            return jnp.reshape(x, out_shape)
        return _pallas_copy_reshape(x, out_shape)


if __name__ == "__main__":
    key = jax.random.PRNGKey(0)

    # Small NCHW-ish activation: default (metadata-only) path.
    x = jax.random.normal(key, (2, 4, 16, 16), dtype=jnp.float32)
    y = jax.block_until_ready(Reshape(2, -1)(x))
    assert y.shape == (2, 4 * 16 * 16)
    assert y.dtype == x.dtype
    assert bool(jnp.array_equal(y, jnp.reshape(x, (2, -1))))

    y2 = jax.block_until_ready(Reshape(8, 16, 16)(x))
    assert y2.shape == (8, 16, 16)
    assert bool(jnp.array_equal(y2, jnp.reshape(x, (8, 16, 16))))

    # Materializing path (exercises the Pallas HBM->HBM DMA kernel):
    # 8 MiB buffer, split into 2 chunks (keeps both v7x TensorCores busy).
    xb = jax.random.normal(jax.random.PRNGKey(1), (2, 4, 512, 512),
                           dtype=jnp.float32)
    y3 = jax.block_until_ready(Reshape(-1, 512, materialize=True)(xb))
    assert y3.shape == (2 * 4 * 512, 512)
    assert bool(jnp.array_equal(y3, jnp.reshape(xb, (-1, 512))))

    # Ragged case: rows=515 does not split evenly -> static-size tail chunk.
    xc = jax.random.normal(jax.random.PRNGKey(2), (2, 4, 515, 128),
                           dtype=jnp.float32)
    y4 = jax.block_until_ready(Reshape(-1, 128, materialize=True)(xc))
    assert y4.shape == (2 * 4 * 515, 128)
    assert bool(jnp.array_equal(y4, jnp.reshape(xc, (-1, 128))))

    print("KERNEL_OK")
</pallas_src>

<mosaic_0001>
module attributes {stable_mosaic.version = 11 : i64} {
  func.func @_hbm_copy_kernel(%arg0: i32, %arg1: memref<256x8192xf32, #tpu.memory_space<any>>, %arg2: memref<256x8192xf32, #tpu.memory_space<any>>, %arg3: memref<1x!tpu.dma_semaphore, #tpu.memory_space<semaphore_mem>>) attributes {dimension_semantics = [#tpu.dimension_semantics<parallel>], iteration_bounds = array<i64: 2>, scalar_prefetch = 0 : i64, scratch_operands = 1 : i64, tpu.core_type = #tpu.core_type<tc>, window_params = [{}, {}]} {
    %c128_i32 = arith.constant 128 : i32
    %0 = arith.muli %arg0, %c128_i32 : i32
    %c1_i32 = arith.constant 1 : i32
    %1 = arith.cmpi slt, %arg0, %c1_i32 : i32
    %2 = arith.extui %1 : i1 to i32
    %c0_i32 = arith.constant 0 : i32
    %3 = arith.cmpi ne, %2, %c0_i32 : i32
    scf.if %3 {
      %c0_i32_2 = arith.constant 0 : i32
      %c0_i32_3 = arith.constant 0 : i32
      %7 = tpu.memref_slice %arg1[%0, %c0_i32_3] : memref<256x8192xf32, #tpu.memory_space<any>> -> memref<128x8192xf32, #tpu.memory_space<any>>
      %c0_i32_4 = arith.constant 0 : i32
      %8 = tpu.memref_slice %arg2[%0, %c0_i32_4] : memref<256x8192xf32, #tpu.memory_space<any>> -> memref<128x8192xf32, #tpu.memory_space<any>>
      %9 = tpu.memref_slice %arg3[%c0_i32_2] : memref<1x!tpu.dma_semaphore, #tpu.memory_space<semaphore_mem>> -> memref<1x!tpu.dma_semaphore, #tpu.memory_space<semaphore_mem>>
      %10 = tpu.memref_squeeze %9 : memref<1x!tpu.dma_semaphore, #tpu.memory_space<semaphore_mem>> -> memref<!tpu.dma_semaphore, #tpu.memory_space<semaphore_mem>>
      tpu.enqueue_dma source(%7 : memref<128x8192xf32, #tpu.memory_space<any>>) target(%8 : memref<128x8192xf32, #tpu.memory_space<any>>) target_semaphore(%10 : memref<!tpu.dma_semaphore, #tpu.memory_space<semaphore_mem>>)
      %c0_i32_5 = arith.constant 0 : i32
      %c0_i32_6 = arith.constant 0 : i32
      %11 = tpu.memref_slice %arg1[%0, %c0_i32_6] : memref<256x8192xf32, #tpu.memory_space<any>> -> memref<128x8192xf32, #tpu.memory_space<any>>
      %c0_i32_7 = arith.constant 0 : i32
      %12 = tpu.memref_slice %arg2[%0, %c0_i32_7] : memref<256x8192xf32, #tpu.memory_space<any>> -> memref<128x8192xf32, #tpu.memory_space<any>>
      %13 = tpu.memref_slice %arg3[%c0_i32_5] : memref<1x!tpu.dma_semaphore, #tpu.memory_space<semaphore_mem>> -> memref<1x!tpu.dma_semaphore, #tpu.memory_space<semaphore_mem>>
      %14 = tpu.memref_squeeze %13 : memref<1x!tpu.dma_semaphore, #tpu.memory_space<semaphore_mem>> -> memref<!tpu.dma_semaphore, #tpu.memory_space<semaphore_mem>>
      tpu.wait_dma2 semaphore(%14 : memref<!tpu.dma_semaphore, #tpu.memory_space<semaphore_mem>>) src(%11 : memref<128x8192xf32, #tpu.memory_space<any>>) dst(%12 : memref<128x8192xf32, #tpu.memory_space<any>>)
    } else {
    }
    %c1_i32_0 = arith.constant 1 : i32
    %4 = arith.cmpi eq, %arg0, %c1_i32_0 : i32
    %5 = arith.extui %4 : i1 to i32
    %c0_i32_1 = arith.constant 0 : i32
    %6 = arith.cmpi ne, %5, %c0_i32_1 : i32
    scf.if %6 {
      %c0_i32_2 = arith.constant 0 : i32
      %c0_i32_3 = arith.constant 0 : i32
      %7 = tpu.memref_slice %arg1[%0, %c0_i32_3] : memref<256x8192xf32, #tpu.memory_space<any>> -> memref<128x8192xf32, #tpu.memory_space<any>>
      %c0_i32_4 = arith.constant 0 : i32
      %8 = tpu.memref_slice %arg2[%0, %c0_i32_4] : memref<256x8192xf32, #tpu.memory_space<any>> -> memref<128x8192xf32, #tpu.memory_space<any>>
      %9 = tpu.memref_slice %arg3[%c0_i32_2] : memref<1x!tpu.dma_semaphore, #tpu.memory_space<semaphore_mem>> -> memref<1x!tpu.dma_semaphore, #tpu.memory_space<semaphore_mem>>
      %10 = tpu.memref_squeeze %9 : memref<1x!tpu.dma_semaphore, #tpu.memory_space<semaphore_mem>> -> memref<!tpu.dma_semaphore, #tpu.memory_space<semaphore_mem>>
      tpu.enqueue_dma source(%7 : memref<128x8192xf32, #tpu.memory_space<any>>) target(%8 : memref<128x8192xf32, #tpu.memory_space<any>>) target_semaphore(%10 : memref<!tpu.dma_semaphore, #tpu.memory_space<semaphore_mem>>)
      %c0_i32_5 = arith.constant 0 : i32
      %c0_i32_6 = arith.constant 0 : i32
      %11 = tpu.memref_slice %arg1[%0, %c0_i32_6] : memref<256x8192xf32, #tpu.memory_space<any>> -> memref<128x8192xf32, #tpu.memory_space<any>>
      %c0_i32_7 = arith.constant 0 : i32
      %12 = tpu.memref_slice %arg2[%0, %c0_i32_7] : memref<256x8192xf32, #tpu.memory_space<any>> -> memref<128x8192xf32, #tpu.memory_space<any>>
      %13 = tpu.memref_slice %arg3[%c0_i32_5] : memref<1x!tpu.dma_semaphore, #tpu.memory_space<semaphore_mem>> -> memref<1x!tpu.dma_semaphore, #tpu.memory_space<semaphore_mem>>
      %14 = tpu.memref_squeeze %13 : memref<1x!tpu.dma_semaphore, #tpu.memory_space<semaphore_mem>> -> memref<!tpu.dma_semaphore, #tpu.memory_space<semaphore_mem>>
      tpu.wait_dma2 semaphore(%14 : memref<!tpu.dma_semaphore, #tpu.memory_space<semaphore_mem>>) src(%11 : memref<128x8192xf32, #tpu.memory_space<any>>) dst(%12 : memref<128x8192xf32, #tpu.memory_space<any>>)
    } else {
    }
    return
  }
}

</mosaic_0001>

<bundles_post_ra>
// kernel: tpu_custom_call.1
= control target key start
LH: loop header
LB: loop body
LE: loop exit
PB: predicated region body
PF: predicated region fallthrough
CT: control target
= control target key end

     0   :  { %s135_s6 = smov 0   ;;  %s159_s0 = inlined_call_operand.hbm [shape: f32[256,8192], index: 0, kind: input, shape index: {}]   ;;  %s160_s1 = inlined_call_operand.hbm [shape: f32[256,8192], index: 1, kind: output, shape index: {}]  }
   0x1 LB: > { %s89_s7 = sshll.u32 %s137_s6, 7  ;;  %p109_p0 = scmp.lt.s32.totalorder %s137_s6, 1  ;;  %s137_s6 = sphi %s135_s6, %s11_s6  }
   0x2   : > { %s18_s8 = sshra.s32 %s89_s7, 3  ;;  %s139_s16 = smov [#allocation2]  }
   0x3   : > { %s99_s9 = sshll.u32 %s18_s8, 13  ;;  %s140_s17 = smov [#allocation3]  }
   0x4   : > { %s22_s12 = scalar_lea.hbm %s159_s0, %s99_s9  ;;  %s24_s15 = scalar_lea.hbm %s160_s1, %s99_s9 }
   0x5   : > { %s141_s18 = smov 0  }
   0x6   : > { %104 = dma.general (%p109_p0), %s22_s12, 131072, %s24_s15, %s139_s16, %s140_s17, [#allocation4], %s141_s18, 0  }
   0x7   : > { %128 = dma.done.wait (%p109_p0), [#allocation2], 131072 }
   0x8   : > { %130 = vsyncadd (%p109_p0), [#allocation2], 4294836224  ;;  %p110_p1 = scmp.eq.s32.totalorder %s137_s6, 1  ;;  %s142_s19 = smov [#allocation5]  }
   0xa   : > { %107 = dma.general (%p110_p1), %s22_s12, 131072, %s24_s15, %s139_s16, %s142_s19, [#allocation6], %s141_s18, 0  }
   0xb   : > { %132 = dma.done.wait (%p110_p1), [#allocation2], 131072 }
   0xc   : > { %134 = vsyncadd (%p110_p1), [#allocation2], 4294836224  ;;  %s11_s6 = sadd.s32 1, %s137_s6  }
   0xd   : > { %p8_p2 = scmp.ge.s32.totalorder %s11_s6, 2  }
   0xf   :  { %10 = sbr.rel (!%p8_p2) target bundleno = 1 (0x1), region = 31 }
  0x16   :  { %70 = vsyncmov [#allocation2] }
  0x19   :  { %s71_s20 = vpop.sfrf %70 }
  0x1a   :  { %p98_p3 = scmp.ne.s32.totalorder %s71_s20, 0 }
  0x1c   :  { %75 = shalt.err (%p98_p3)  }

</bundles_post_ra>
